<compile_context>
chip_gen: v6e
topology: v6e:2x2x1
jax: 0.10.0
libtpu: 0.0.40
codegen_flags: <defaults>
</compile_context>

<pallas_src>
import jax
import jax.numpy as jnp
from jax.experimental import pallas as pl
from jax.experimental.pallas import tpu as pltpu


def _add_kernel(a_ref, b_ref, o_ref):
    # Hot path: VPU elementwise add of one VMEM tile.
    o_ref[...] = a_ref[...] + b_ref[...]


def _round_up(x, m):
    return ((x + m - 1) // m) * m


# Lane-dense slab width (multiple of 128) and max rows per tile.
_LANE_W = 512
_MAX_TILE_ROWS = 512


def my_network_forward(input1, input2):
    """Equivalent of MyNetwork.forward: returns input1 + input2."""
    assert input1.shape == input2.shape, "MyAddModule requires equal shapes"
    assert input1.dtype == input2.dtype
    orig_shape = input1.shape
    dtype = input1.dtype

    n = 1
    for d in orig_shape:
        n *= d

    # Lane-dense layout: flatten everything to (rows_p, 512).
    rows = pl.cdiv(n, _LANE_W)
    # Tile rows: at most 512, aligned to the 8-sublane granule.
    tile_rows = min(_MAX_TILE_ROWS, _round_up(rows, 8))
    rows_p = _round_up(rows, tile_rows)
    padded_n = rows_p * _LANE_W

    a = input1.reshape(-1)
    b = input2.reshape(-1)
    if padded_n != n:
        pad = padded_n - n
        a = jnp.pad(a, (0, pad))
        b = jnp.pad(b, (0, pad))
    a2d = a.reshape(rows_p, _LANE_W)
    b2d = b.reshape(rows_p, _LANE_W)

    grid = (rows_p // tile_rows,)
    tile_spec = pl.BlockSpec((tile_rows, _LANE_W), lambda i: (i, 0))

    out2d = pl.pallas_call(
        _add_kernel,
        out_shape=jax.ShapeDtypeStruct((rows_p, _LANE_W), dtype),
        grid=grid,
        in_specs=[tile_spec, tile_spec],
        out_specs=tile_spec,
        compiler_params=pltpu.CompilerParams(
            dimension_semantics=("parallel",),
        ),
    )(a2d, b2d)

    out_flat = out2d.reshape(-1)
    if padded_n != n:
        out_flat = out_flat[:n]
    return out_flat.reshape(orig_shape)


if __name__ == "__main__":
    key = jax.random.PRNGKey(0)
    k1, k2 = jax.random.split(key)

    # Small NCHW inputs: batch=2, channels=4, spatial=16x16.
    x1 = jax.random.normal(k1, (2, 4, 16, 16), dtype=jnp.float32)
    x2 = jax.random.normal(k2, (2, 4, 16, 16), dtype=jnp.float32)

    out = my_network_forward(x1, x2)
    out = jax.block_until_ready(out)

    # Correctness check against the pure-JAX reference.
    ref = x1 + x2
    assert out.shape == ref.shape
    assert out.dtype == ref.dtype
    assert jnp.allclose(out, ref, atol=1e-6), "mismatch vs reference add"

    print("KERNEL_OK")
</pallas_src>

<mosaic_0001>
module attributes {stable_mosaic.version = 11 : i64} {
  func.func @_add_kernel(%arg0: i32, %arg1: memref<8x512xf32, #tpu.memory_space<vmem>>, %arg2: memref<8x512xf32, #tpu.memory_space<vmem>>, %arg3: memref<8x512xf32, #tpu.memory_space<vmem>>) attributes {dimension_semantics = [#tpu.dimension_semantics<parallel>], iteration_bounds = array<i64: 1>, scalar_prefetch = 0 : i64, scratch_operands = 0 : i64, tpu.core_type = #tpu.core_type<tc>, window_params = [{transform_indices = @transform_0, window_bounds = array<i64: 8, 512>}, {transform_indices = @transform_1, window_bounds = array<i64: 8, 512>}, {transform_indices = @transform_2, window_bounds = array<i64: 8, 512>}]} {
    %c0 = arith.constant 0 : index
    %c0_0 = arith.constant 0 : index
    %0 = vector.load %arg1[%c0, %c0_0] : memref<8x512xf32, #tpu.memory_space<vmem>>, vector<8x512xf32>
    %c0_1 = arith.constant 0 : index
    %c0_2 = arith.constant 0 : index
    %1 = vector.load %arg2[%c0_1, %c0_2] : memref<8x512xf32, #tpu.memory_space<vmem>>, vector<8x512xf32>
    %2 = arith.addf %0, %1 : vector<8x512xf32>
    %c0_3 = arith.constant 0 : index
    %c0_4 = arith.constant 0 : index
    %3 = vector.load %arg3[%c0_3, %c0_4] : memref<8x512xf32, #tpu.memory_space<vmem>>, vector<8x512xf32>
    tpu.vector_store %arg3[%c0_3, %c0_4], %2 {strides = array<i32>} : memref<8x512xf32, #tpu.memory_space<vmem>>, vector<8x512xf32>,
    return
  }
  func.func @transform_0(%arg0: i32) -> (i32, i32) {
    %c0_i32 = arith.constant 0 : i32
    %c0_i32_0 = arith.constant 0 : i32
    return %arg0, %c0_i32 : i32, i32
  }
  func.func @transform_1(%arg0: i32) -> (i32, i32) {
    %c0_i32 = arith.constant 0 : i32
    %c0_i32_0 = arith.constant 0 : i32
    return %arg0, %c0_i32 : i32, i32
  }
  func.func @transform_2(%arg0: i32) -> (i32, i32) {
    %c0_i32 = arith.constant 0 : i32
    %c0_i32_0 = arith.constant 0 : i32
    return %arg0, %c0_i32 : i32, i32
  }
}

</mosaic_0001>

<bundles_post_ra>
// kernel: tpu_custom_call.1
= control target key start
LH: loop header
LB: loop body
LE: loop exit
PB: predicated region body
PF: predicated region fallthrough
CT: control target
= control target key end

     0   :  { %7 = vsyncpa [#allocation3], 0  ;;  %s164_s0 = inlined_call_operand.hbm [shape: f32[8,512], index: 0, kind: input, shape index: {}]   ;;  %s165_s1 = inlined_call_operand.hbm [shape: f32[8,512], index: 1, kind: input, shape index: {}]   ;;  %s166_s2 = inlined_call_operand.hbm [shape: f32[8,512], index: 2, kind: output, shape index: {}]  }
   0x1   :  { %8 = vsyncpa [#allocation6], 0 }
   0x2   :  { %9 = vsyncpa [#allocation4], 0  ;;  %s137_s9 = smov [#allocation2]   ;;  %s138_s11 = smov [#allocation5]  }
   0x3   :  { %s16_s10 = sshll.u32 %s137_s9, 4  ;;  %s26_s12 = sshll.u32 %s138_s11, 4  ;;  %s17_s10 = int_to_ptr.vmem [resolvable:$true] %s16_s10  ;;  %s27_s12 = int_to_ptr.vmem [resolvable:$true] %s26_s12 }
   0x4   :  { %s79_s13 = scalar_lea.vmem %s17_s10, 512  ;;  %p84_p1 = scmp.lt.s32.totalorder %s17_s10, %s17_s10 }
   0x5   :  { %p80_p0 = scmp.ne.s32.totalorder %s17_s10, %s79_s13  ;;  %p85_p2 = scmp.lt.s32.totalorder %s79_s13, %s79_s13 }
   0x7   :  { %p86_p3 = por %p85_p2, %p84_p1 }
   0x9   :  { %p87_p4 = pnand %p86_p3, %p80_p0 }
   0xb   :  { %90 = shalt.err (!%p87_p4)
}
   0xc   :  { %19 = dma.hbm_to_vmem [thread:$0]  %s164_s0, 512, %s17_s10, [#allocation3]  }
   0xd   :  { %s99_s16 = scalar_lea.vmem %s27_s12, 512  ;;  %p104_p6 = scmp.lt.s32.totalorder %s27_s12, %s27_s12 }
   0xe   :  { %p100_p5 = scmp.ne.s32.totalorder %s27_s12, %s99_s16  ;;  %p105_p7 = scmp.lt.s32.totalorder %s99_s16, %s99_s16 }
  0x10   :  { %p106_p8 = por %p105_p7, %p104_p6 }
  0x12   :  { %p107_p9 = pnand %p106_p8, %p100_p5 }
  0x14   :  { %110 = shalt.err (!%p107_p9)
}
  0x15   :  { %29 = dma.hbm_to_vmem [thread:$0]  %s165_s1, 512, %s27_s12, [#allocation6]  }
  0x16   :  { %131 = dma.done.wait [#allocation3], 512  }
  0x17   :  { %132 = vsyncadd [#allocation3], 4294966784 }
  0x18   :  { %133 = dma.done.wait [#allocation6], 512  }
  0x19   :  { %134 = vsyncadd [#allocation6], 4294966784  ;;  %v36_v0 = vld [vmem:[#allocation2] sm:$0xff]  ;;  %v37_v2 = vld [vmem:[#allocation2 + $0x8] sm:$0xff]  ;;  %s139_s19 = smov [#allocation7]  }
  0x1a   :  { %v40_v1 = vld [vmem:[#allocation5] sm:$0xff]  ;;  %s58_s0 = sshll.u32 %s139_s19, 4  ;;  %v41_v4 = vld [vmem:[#allocation5 + $0x8] sm:$0xff]  ;;  %v38_v5 = vld [vmem:[#allocation2 + $0x10] sm:$0xff]  ;;  %s59_s0 = int_to_ptr.vmem [resolvable:$true] %s58_s0 }
  0x1b   :  { %v44_v3 = vadd.f32 %v40_v1, %v36_v0  ;;  %v42_v6 = vld [vmem:[#allocation5 + $0x10] sm:$0xff]  ;;  %v45_v7 = vadd.f32 %v41_v4, %v37_v2  ;;  %v39_v9 = vld [vmem:[#allocation2 + $0x18] sm:$0xff]  ;;  %s111_s1 = scalar_lea.vmem %s59_s0, 512  ;;  %p116_p11 = scmp.lt.s32.totalorder %s59_s0, %s59_s0 }
  0x1c   :  { %v46_v8 = vadd.f32 %v42_v6, %v38_v5  ;;  %v43_v10 = vld [vmem:[#allocation5 + $0x18] sm:$0xff]  ;;  %p112_p10 = scmp.ne.s32.totalorder %s59_s0, %s111_s1  ;;  %p117_p12 = scmp.lt.s32.totalorder %s111_s1, %s111_s1 }
  0x1d   :  { %48 = vst [vmem:[#allocation7] sm:$0xff] %v44_v3  ;;  %v47_v11 = vadd.f32 %v43_v10, %v39_v9  ;;  %49 = vst [vmem:[#allocation7 + $0x8] sm:$0xff] %v45_v7 }
  0x1e   :  { %50 = vst [vmem:[#allocation7 + $0x10] sm:$0xff] %v46_v8  ;;  %p118_p13 = por %p117_p12, %p116_p11 }
  0x1f   :  { %51 = vst [vmem:[#allocation7 + $0x18] sm:$0xff] %v47_v11 }
  0x20   :  { %p119_p0 = pnand %p118_p13, %p112_p10 }
  0x22   :  { %122 = shalt.err (!%p119_p0)
}
  0x23   :  { %61 = dma.vmem_to_hbm [thread:$0]  %s59_s0, 512, %s166_s2, [#allocation4]  }
  0x24   :  { %135 = dma.done.wait [#allocation4], 512  }
  0x25   :  { %136 = vsyncadd [#allocation4], 4294966784 }
  0x26   :  { %65 = vsyncpa [#allocation3], 1 }
  0x27   :  { %66 = vsyncpa [#allocation6], 1 }
  0x28   :  { %67 = vsyncpa [#allocation4], 1 }

</bundles_post_ra>
